<compile_context>
chip_gen: v7x
topology: tpu7x:2x2x1
jax: 0.10.0
libtpu: 0.0.40
codegen_flags: <defaults>
</compile_context>

<pallas_src>
import functools

import numpy as np
import jax
import jax.numpy as jnp
from jax import lax
from jax.experimental import pallas as pl
from jax.experimental.pallas import tpu as pltpu


def _round_up(x, m):
    return -(-x // m) * m


# --------------------------------------------------------------------------- #
# Pallas kernel: one [C_out, T_TILE] output tile of the grouped, dilated,
# strided valid conv, computed as a single tap-fused MXU matmul.
# --------------------------------------------------------------------------- #
def _conv1d_kernel(x_ref, halo_ref, w_ref, b_ref, y_ref, xbuf, xstk, *,
                   K, dilation, stride, groups, c_in, t_tile, fuse_groups):
    """
    x_ref:    [stride*C_in, t_tile]     polyphase input tile (bf16)
    halo_ref: [1, stride*C_in, halo]    first few polyphase cols of tile j+1
    w_ref:    [C_out, R]                packed tap-fused weight (bf16, resident)
    b_ref:    [C_out, 1]                bias (f32, resident)
    y_ref:    [C_out, t_tile]           output tile (f32)
    xbuf:     VMEM scratch [stride*C_in, t_tile + halo]
    xstk:     VMEM scratch [R, t_tile]  stacked tap windows
    """
    c_out = y_ref.shape[0]

    # Assemble the haloed polyphase tile once (dense VMEM stores, no HBM traffic).
    xbuf[:, :t_tile] = x_ref[...]
    xbuf[:, t_tile:] = halo_ref[0]

    # Static per-tap (phase, offset):  x[ci, t*stride + k*dilation]
    #                                  == x_poly[phase*C_in + ci, t + offset]
    offs = [((k * dilation) % stride, (k * dilation) // stride) for k in range(K)]

    if fuse_groups:
        # Stack all K taps x all C_in channels along sublanes -> one MXU matmul
        # per tile against the block-diagonal packed weight (taps + groups fused).
        for k, (p, o) in enumerate(offs):
            xstk[k * c_in:(k + 1) * c_in, :] = xbuf[p * c_in:(p + 1) * c_in,
                                                    o:o + t_tile]
        y = jnp.dot(w_ref[...], xstk[...], preferred_element_type=jnp.float32)
        # Single lane-dense, full-sublane store; bias folded into the epilogue.
        y_ref[...] = (y + b_ref[...]).astype(y_ref.dtype)
    else:
        # Fallback for very large `groups` (e.g. depthwise), where the
        # block-diagonal weight would waste groups x MXU MACs.  One tap-fused
        # matmul per group.  (Not exercised by the demo below.)
        c_in_g = c_in // groups
        c_out_g = c_out // groups
        for g in range(groups):
            for k, (p, o) in enumerate(offs):
                r0 = p * c_in + g * c_in_g
                xstk[k * c_in_g:(k + 1) * c_in_g, :] = xbuf[r0:r0 + c_in_g,
                                                            o:o + t_tile]
            yg = jnp.dot(w_ref[g * c_out_g:(g + 1) * c_out_g, :], xstk[...],
                         preferred_element_type=jnp.float32)
            y_ref[g * c_out_g:(g + 1) * c_out_g, :] = (
                yg + b_ref[g * c_out_g:(g + 1) * c_out_g, :]).astype(y_ref.dtype)
    # TODO(synk): add a pure-VPU broadcast-FMA path for tiny channel counts
    # (contraction depth << MXU depth), as suggested in the perf review.


# --------------------------------------------------------------------------- #
# Wrapper: polyphase restructuring, weight packing, tiling, pallas_call.
# --------------------------------------------------------------------------- #
@functools.partial(jax.jit, static_argnames=("stride", "dilation", "groups"))
def _conv1d_valid(x, weight, bias, *, stride, dilation, groups):
    """Exact (valid) grouped/dilated/strided conv1d, matching F.conv1d.

    x:      [C_in, T] float32
    weight: [C_out, C_in//groups, K]
    bias:   [C_out]
    returns [C_out, (T - field)//stride + 1] float32
    """
    compute_dtype = jnp.bfloat16          # native MXU path; f32 accumulation
    C_out, c_in_g, K = weight.shape
    C_in, T = x.shape
    field = dilation * (K - 1) + 1
    T_out = (T - field) // stride + 1

    # ---- tile sizing: biggest lane tile that fits a conservative VMEM budget
    #      (re-derived from the chip so one codepath fits v7x's 64 MiB VMEM). --
    try:
        vmem_cap = int(pltpu.get_tpu_info().vmem_capacity_bytes)
    except Exception:
        vmem_cap = 64 * 1024 * 1024
    budget = vmem_cap // 16               # headroom for double-buffering & scratch
    t_tile = 1024
    while t_tile > 128:
        per_buf = (stride * C_in * t_tile * 2     # bf16 input tile
                   + C_out * t_tile * 4)          # f32 output tile
        if 2 * per_buf <= budget:
            break
        t_tile //= 2
    t_tile = max(128, min(t_tile, _round_up(T_out, 128)))

    n_t = -(-T_out // t_tile)
    T_out_pad = n_t * t_tile
    halo = max(((K - 1) * dilation) // stride, 1)   # inter-tile overlap (polyphase cols)
    U_pad = T_out_pad + halo

    # ---- polyphase restructuring: stride handled by layout, kernel is stride-free.
    #      x_poly[p*C_in + ci, u] == x[ci, u*stride + p]
    xp = jnp.pad(x, ((0, 0), (0, U_pad * stride - T))).astype(compute_dtype)
    x_poly = xp.reshape(C_in, U_pad, stride).transpose(2, 0, 1)
    x_poly = x_poly.reshape(stride * C_in, U_pad)
    # Tiny pre-gathered halo slab per tile: [n_t, stride*C_in, halo]
    cols = (jnp.arange(n_t)[:, None] + 1) * t_tile + jnp.arange(halo)[None, :]
    x_halo = jnp.transpose(x_poly[:, cols], (1, 0, 2))

    # ---- weight packing (host/XLA side, once): taps (and small groups) fused.
    fuse_groups = (groups == 1) or (groups <= 8 and K * C_in <= 512)
    w_t = jnp.transpose(weight, (0, 2, 1))          # [C_out, K, c_in_g]
    if fuse_groups:
        c_out_g = C_out // groups
        wp = jnp.zeros((C_out, K, C_in), weight.dtype)
        for g in range(groups):
            wp = wp.at[g * c_out_g:(g + 1) * c_out_g, :,
                       g * c_in_g:(g + 1) * c_in_g].set(
                w_t[g * c_out_g:(g + 1) * c_out_g])
        w_packed = wp.reshape(C_out, K * C_in)      # block-diagonal over groups
        stk_rows = K * C_in
    else:
        w_packed = w_t.reshape(C_out, K * c_in_g)
        stk_rows = K * c_in_g
    w_packed = w_packed.astype(compute_dtype)
    b2 = bias.reshape(C_out, 1).astype(jnp.float32)

    kernel = functools.partial(
        _conv1d_kernel, K=K, dilation=dilation, stride=stride, groups=groups,
        c_in=C_in, t_tile=t_tile, fuse_groups=fuse_groups)

    y_pad = pl.pallas_call(
        kernel,
        out_shape=jax.ShapeDtypeStruct((C_out, T_out_pad), jnp.float32),
        grid_spec=pltpu.PrefetchScalarGridSpec(
            num_scalar_prefetch=0,
            grid=(n_t,),
            in_specs=[
                # polyphase input tile (pipelined; consider pl.Buffered(3) on v5e
                # if profiling shows exposed DMA)
                pl.BlockSpec((stride * C_in, t_tile), lambda j: (0, j)),
                # per-tile halo slab
                pl.BlockSpec((1, stride * C_in, halo), lambda j: (j, 0, 0)),
                # packed weight + bias: constant index_map -> fetched once, resident
                pl.BlockSpec((C_out, stk_rows), lambda j: (0, 0)),
                pl.BlockSpec((C_out, 1), lambda j: (0, 0)),
            ],
            out_specs=pl.BlockSpec((C_out, t_tile), lambda j: (0, j)),
            scratch_shapes=[
                pltpu.VMEM((stride * C_in, t_tile + halo), compute_dtype),
                pltpu.VMEM((stk_rows, t_tile), compute_dtype),
            ],
        ),
        compiler_params=pltpu.CompilerParams(
            dimension_semantics=("parallel",),       # v7x: shard tiles over both TCs
            vmem_limit_bytes=min(vmem_cap // 2, 64 * 1024 * 1024),
        ),
    )(x_poly, x_halo, w_packed, b2)

    return y_pad[:, :T_out]


# --------------------------------------------------------------------------- #
# Streaming wrapper (same state machine as torchstreamer.core.Conv1dStream).
# --------------------------------------------------------------------------- #
class Conv1dStream:
    """JAX/Pallas port of torchstreamer.core.Conv1dStream (valid conv streaming)."""

    def __init__(self, weight, bias, *, stride, dilation, groups, time_bucket=512):
        self.weight = jnp.asarray(weight)                      # [C_out, C_in/groups, K]
        c_out = self.weight.shape[0]
        self.bias = (jnp.asarray(bias) if bias is not None
                     else jnp.zeros((c_out,), self.weight.dtype))
        k = self.weight.shape[-1]
        self.field = dilation * (k - 1) + 1
        self.stride = stride
        self.dilation = dilation
        self.groups = groups
        # Pad every launch to a fixed time bucket so jit/pallas compile once per
        # stream configuration instead of once per distinct chunk length.
        self.time_bucket = max(int(time_bucket), self.field + self.stride)
        self.x_buffer = []
        self.x_length = 0
        self.x_skip = 0

    def __call__(self, x, final=False):
        # TODO(synk): `final` is accepted but unused, matching the reference forward().
        y = None
        self.x_buffer.append(x)
        self.x_length += x.shape[-1]
        if self.x_length - self.x_skip >= self.field:
            x = jnp.concatenate(self.x_buffer, axis=-1)[..., self.x_skip:]
            self.x_buffer.clear()
            self.x_length = 0
            steps = (x.shape[-1] - self.field) // self.stride
            valid = self.field + steps * self.stride
            next_ = (steps + 1) * self.stride
            t_out = steps + 1
            # Shape-bucketed launch: pad the valid window, trim the exact output.
            bucket = _round_up(valid, self.time_bucket)
            x_call = jnp.pad(x[..., :valid], ((0, 0), (0, bucket - valid)))
            y_full = _conv1d_valid(x_call, self.weight, self.bias,
                                   stride=self.stride, dilation=self.dilation,
                                   groups=self.groups)
            y = y_full[..., :t_out]
            self.x_buffer.append(x[..., next_:])
            self.x_length += max(x.shape[-1] - next_, 0)
            self.x_skip = max(next_ - x.shape[-1], 0)
        return y


def conv1d_ref(x, weight, bias, stride, dilation, groups):
    """Plain-JAX reference (equivalent to F.conv1d with VALID padding)."""
    out = lax.conv_general_dilated(
        x[None].astype(jnp.float32), weight.astype(jnp.float32),
        window_strides=(stride,), padding='VALID',
        rhs_dilation=(dilation,),
        dimension_numbers=('NCH', 'OIH', 'NCH'),
        feature_group_count=groups,
        precision=lax.Precision.HIGHEST)[0]
    if bias is not None:
        out = out + bias[:, None]
    return out


if __name__ == "__main__":
    key = jax.random.PRNGKey(0)
    C_in, C_out, K = 4, 8, 3
    stride, dilation, groups = 2, 2, 2          # field = 2*(3-1)+1 = 5
    chunk, n_chunks = 8, 5

    kw, kb, kx = jax.random.split(key, 3)
    weight = jax.random.normal(kw, (C_out, C_in // groups, K), jnp.float32) * 0.3
    bias = jax.random.normal(kb, (C_out,), jnp.float32) * 0.1
    full_x = jax.random.normal(kx, (C_in, chunk * n_chunks), jnp.float32)

    stream = Conv1dStream(weight, bias, stride=stride, dilation=dilation, groups=groups)
    outs = []
    for i in range(n_chunks):
        y = stream(full_x[:, i * chunk:(i + 1) * chunk], final=(i == n_chunks - 1))
        if y is not None:
            outs.append(y)

    y_stream = jnp.concatenate(outs, axis=-1)
    jax.block_until_ready(y_stream)

    # The kernel feeds the MXU with bf16 inputs (f32 accumulation), so compare
    # against an f32 reference computed on identically bf16-quantized inputs.
    xq = full_x.astype(jnp.bfloat16).astype(jnp.float32)
    wq = weight.astype(jnp.bfloat16).astype(jnp.float32)
    y_ref = conv1d_ref(xq, wq, bias, stride, dilation, groups)
    np.testing.assert_allclose(np.asarray(y_stream), np.asarray(y_ref),
                               rtol=1e-4, atol=1e-4)
    print("KERNEL_OK")
</pallas_src>

<mosaic_0001>
module attributes {stable_mosaic.version = 11 : i64} {
  func.func @_conv1d_kernel(%arg0: i32, %arg1: memref<8x256xbf16, #tpu.memory_space<vmem>>, %arg2: memref<1x8x2xbf16, #tpu.memory_space<vmem>>, %arg3: memref<8x12xbf16, #tpu.memory_space<vmem>>, %arg4: memref<8x1xf32, #tpu.memory_space<vmem>>, %arg5: memref<8x256xf32, #tpu.memory_space<vmem>>, %arg6: memref<8x258xbf16, #tpu.memory_space<vmem>>, %arg7: memref<12x256xbf16, #tpu.memory_space<vmem>>) attributes {dimension_semantics = [#tpu.dimension_semantics<parallel>], iteration_bounds = array<i64: 1>, scalar_prefetch = 0 : i64, scratch_operands = 2 : i64, tpu.core_type = #tpu.core_type<tc>, window_params = [{transform_indices = @transform_0, window_bounds = array<i64: 8, 256>}, {transform_indices = @transform_1, window_bounds = array<i64: 1, 8, 2>}, {pipeline_mode = #tpu.pipeline_mode<synchronous>, transform_indices = @transform_2, window_bounds = array<i64: 8, 12>}, {pipeline_mode = #tpu.pipeline_mode<synchronous>, transform_indices = @transform_3, window_bounds = array<i64: 8, 1>}, {transform_indices = @transform_4, window_bounds = array<i64: 8, 256>}]} {
    %c0 = arith.constant 0 : index
    %c0_0 = arith.constant 0 : index
    %0 = vector.load %arg1[%c0, %c0_0] : memref<8x256xbf16, #tpu.memory_space<vmem>>, vector<8x256xbf16>
    %c0_1 = arith.constant 0 : index
    %c0_2 = arith.constant 0 : index
    %1 = vector.load %arg6[%c0_1, %c0_2] : memref<8x258xbf16, #tpu.memory_space<vmem>>, vector<8x256xbf16>
    tpu.vector_store %arg6[%c0_1, %c0_2], %0 {strides = array<i32>} : memref<8x258xbf16, #tpu.memory_space<vmem>>, vector<8x256xbf16>,
    %c0_3 = arith.constant 0 : index
    %c0_4 = arith.constant 0 : index
    %c0_5 = arith.constant 0 : index
    %2 = vector.load %arg2[%c0_3, %c0_4, %c0_5] : memref<1x8x2xbf16, #tpu.memory_space<vmem>>, vector<1x8x2xbf16>
    %3 = vector.shape_cast %2 : vector<1x8x2xbf16> to vector<8x2xbf16>
    %c0_6 = arith.constant 0 : index
    %c256 = arith.constant 256 : index
    %4 = vector.load %arg6[%c0_6, %c256] : memref<8x258xbf16, #tpu.memory_space<vmem>>, vector<8x2xbf16>
    tpu.vector_store %arg6[%c0_6, %c256], %3 {strides = array<i32>} : memref<8x258xbf16, #tpu.memory_space<vmem>>, vector<8x2xbf16>,
    %c0_7 = arith.constant 0 : index
    %c0_8 = arith.constant 0 : index
    %5 = vector.load %arg6[%c0_7, %c0_8] : memref<8x258xbf16, #tpu.memory_space<vmem>>, vector<4x256xbf16>
    %c0_9 = arith.constant 0 : index
    %c0_10 = arith.constant 0 : index
    %6 = vector.load %arg7[%c0_9, %c0_10] : memref<12x256xbf16, #tpu.memory_space<vmem>>, vector<4x256xbf16>
    tpu.vector_store %arg7[%c0_9, %c0_10], %5 {strides = array<i32>} : memref<12x256xbf16, #tpu.memory_space<vmem>>, vector<4x256xbf16>,
    %c0_11 = arith.constant 0 : index
    %c1 = arith.constant 1 : index
    %7 = vector.load %arg6[%c0_11, %c1] : memref<8x258xbf16, #tpu.memory_space<vmem>>, vector<4x256xbf16>
    %c4 = arith.constant 4 : index
    %c0_12 = arith.constant 0 : index
    %8 = vector.load %arg7[%c4, %c0_12] : memref<12x256xbf16, #tpu.memory_space<vmem>>, vector<4x256xbf16>
    tpu.vector_store %arg7[%c4, %c0_12], %7 {strides = array<i32>} : memref<12x256xbf16, #tpu.memory_space<vmem>>, vector<4x256xbf16>,
    %c0_13 = arith.constant 0 : index
    %c2 = arith.constant 2 : index
    %9 = vector.load %arg6[%c0_13, %c2] : memref<8x258xbf16, #tpu.memory_space<vmem>>, vector<4x256xbf16>
    %c8 = arith.constant 8 : index
    %c0_14 = arith.constant 0 : index
    %10 = vector.load %arg7[%c8, %c0_14] : memref<12x256xbf16, #tpu.memory_space<vmem>>, vector<4x256xbf16>
    tpu.vector_store %arg7[%c8, %c0_14], %9 {strides = array<i32>} : memref<12x256xbf16, #tpu.memory_space<vmem>>, vector<4x256xbf16>,
    %c0_15 = arith.constant 0 : index
    %c0_16 = arith.constant 0 : index
    %11 = vector.load %arg3[%c0_15, %c0_16] : memref<8x12xbf16, #tpu.memory_space<vmem>>, vector<8x12xbf16>
    %c0_17 = arith.constant 0 : index
    %c0_18 = arith.constant 0 : index
    %12 = vector.load %arg7[%c0_17, %c0_18] : memref<12x256xbf16, #tpu.memory_space<vmem>>, vector<12x256xbf16>
    %cst = arith.constant dense<0.000000e+00> : vector<8x256xf32>
    %13 = tpu.matmul %11, %12, %cst {dimension_numbers = #tpu.dot_dimension_numbers<[1], [0], [0], [1], [0, 0, 1, 1], [], []>} : vector<8x12xbf16>, vector<12x256xbf16>, vector<8x256xf32> -> vector<8x256xf32>
    %c0_19 = arith.constant 0 : index
    %c0_20 = arith.constant 0 : index
    %14 = vector.load %arg4[%c0_19, %c0_20] : memref<8x1xf32, #tpu.memory_space<vmem>>, vector<8x1xf32>
    %15 = vector.broadcast %14 : vector<8x1xf32> to vector<8x256xf32>
    %16 = arith.addf %13, %15 : vector<8x256xf32>
    %c0_21 = arith.constant 0 : index
    %c0_22 = arith.constant 0 : index
    %17 = vector.load %arg5[%c0_21, %c0_22] : memref<8x256xf32, #tpu.memory_space<vmem>>, vector<8x256xf32>
    tpu.vector_store %arg5[%c0_21, %c0_22], %16 {strides = array<i32>} : memref<8x256xf32, #tpu.memory_space<vmem>>, vector<8x256xf32>,
    return
  }
  func.func @transform_0(%arg0: i32) -> (i32, i32) {
    %c0_i32 = arith.constant 0 : i32
    %c0_i32_0 = arith.constant 0 : i32
    return %c0_i32, %arg0 : i32, i32
  }
  func.func @transform_1(%arg0: i32) -> (i32, i32, i32) {
    %c0_i32 = arith.constant 0 : i32
    %c0_i32_0 = arith.constant 0 : i32
    %c0_i32_1 = arith.constant 0 : i32
    return %arg0, %c0_i32, %c0_i32_0 : i32, i32, i32
  }
  func.func @transform_2(%arg0: i32) -> (i32, i32) {
    %c0_i32 = arith.constant 0 : i32
    %c0_i32_0 = arith.constant 0 : i32
    %c0_i32_1 = arith.constant 0 : i32
    return %c0_i32, %c0_i32_0 : i32, i32
  }
  func.func @transform_3(%arg0: i32) -> (i32, i32) {
    %c0_i32 = arith.constant 0 : i32
    %c0_i32_0 = arith.constant 0 : i32
    %c0_i32_1 = arith.constant 0 : i32
    return %c0_i32, %c0_i32_0 : i32, i32
  }
  func.func @transform_4(%arg0: i32) -> (i32, i32) {
    %c0_i32 = arith.constant 0 : i32
    %c0_i32_0 = arith.constant 0 : i32
    return %c0_i32, %arg0 : i32, i32
  }
}

</mosaic_0001>

<bundles_post_ra>
// kernel: _conv1d_valid.1
= control target key start
LH: loop header
LB: loop body
LE: loop exit
PB: predicated region body
PF: predicated region fallthrough
CT: control target
= control target key end

     0   :  { %vm22_vm0 = vcmask 11264   ;;  %s233_s0 = inlined_call_operand.vmem [shape: bf16[8,258], index: 0, kind: input, shape index: {}]   ;;  %s234_s1 = inlined_call_operand.vmem [shape: bf16[1,8,2], index: 1, kind: input, shape index: {}]   ;;  %s235_s2 = inlined_call_operand.vmem [shape: bf16[8,12], index: 2, kind: input, shape index: {}]   ;;  %s236_s3 = inlined_call_operand.vmem [shape: f32[8,1], index: 3, kind: input, shape index: {}]   ;;  %s237_s4 = inlined_call_operand.hbm [shape: f32[8,256], index: 4, kind: output, shape index: {}]  }
   0x1   :  { %v19_v0 = vld [vmem:[%s233_s0] sm:$0xff] }
   0x2   :  { %v21_v1 = vld [vmem:[%s234_s1] sm:$0xf]  ;;  %20 = vst [vmem:[#allocation2] sm:$0xff] %v19_v0 }
   0x3   :  { %23 = vst.msk [vmem:[#allocation2 + $0x8] sm:$0xf] %vm22_vm0, %v21_v1 }
   0x4   :  { %9 = vsyncpa [#allocation5], 0  ;;  %s180_s19 = smov 126   ;;  %s181_s20 = smov 127   ;;  %v182_v9 = vmov 0   ;;  %v62_v10 = vld [vmem:[%s236_s3] sm:$0xff] }
   0x5   :  { %119 = vmatprep.mubr.bf16.mxu0 %v182_v9  ;;  %152 = vset.pattern.permute.xlu0 %v182_v9  ;;  %vm38_vm1 = vcmask 1043456   ;;  %vm55_vm2 = vcmask 1031168   ;;  %vm40_vm3 = vcmask 1039360   ;;  %vm80_vm4 = vcmask 1045504   ;;  %v59_v26 = vld [vmem:[%s235_s2] sm:$0xf] }
   0x6   :  { %vm76_vm5 = vcmask 97280   ;;  %s183_s22 = smov [#allocation4]  }
   0x7   :  { %s136_s23 = sshll.u32 %s183_s22, 4  ;;  %s137_s23 = int_to_ptr.vmem [resolvable:$true] %s136_s23 }
   0x8   :  { %s156_s24 = scalar_lea.vmem %s137_s23, 256  ;;  %p161_p1 = scmp.lt.s32.totalorder %s137_s23, %s137_s23 }
   0x9   :  { %v44_v2 = vld [vmem:[#allocation2] sm:$0x33]  ;;  %p157_p0 = scmp.ne.s32.totalorder %s137_s23, %s156_s24  ;;  %p162_p2 = scmp.lt.s32.totalorder %s156_s24, %s156_s24 }
   0xa   :  { %v26_v3 = vld [vmem:[#allocation2] sm:$0x33]  ;;  %48 = vrot.lane.b32.xlu1 %v44_v2, %s180_s19  ;;  %v27_v5 = vld [vmem:[#allocation2 + $0x8] sm:$0x3] }
   0xb   :  { %v30_v4 = vrot.slane %v26_v3, 6  ;;  %v24_v6 = vld [vmem:[#allocation2] sm:$0x33]  ;;  %v45_v7 = vld [vmem:[#allocation2 + $0x8] sm:$0x3]  ;;  %v31_v8 = vrot.slane %v27_v5, 6  ;;  %p163_p3 = por %p162_p2, %p161_p1 }
   0xc   :  { %25 = vst [vmem:[#allocation3] sm:$0x33] %v24_v6 }
   0xd   :  { %32 = vrot.lane.b32.xlu0 %v30_v4, %s181_s20  ;;  %p164_p4 = pnand %p163_p3, %p157_p0 }
   0xe   :  { %50 = vrot.lane.b32.xlu1 %v45_v7, %s180_s19 }
  0x11   :  { %34 = vrot.lane.b32.xlu0 %v31_v8, %s181_s20 }
  0x15   :  { %65 = vperm.xlu0 %152, %v62_v10  }
  0x7c   :  { %v49_v11 = vpop.permute.xlu1 %48 }
  0x7d   :  { %v52_v14 = vrot.slane %v49_v11, 4 }
  0x7f   :  { %v33_v12 = vpop.permute.xlu0 %32 }
  0x80   :  { %v51_v13 = vpop.permute.xlu1 %50  ;;  %v36_v17 = vrot.slane %v33_v12, 4 }
  0x81   :  { %v53_v15 = vrot.slane %v51_v13, 4 }
  0x83   :  { %v35_v16 = vpop.permute.xlu0 %34  ;;  %v54_v18 = vsel %vm38_vm1, %v52_v14, %v53_v15 }
  0x84   :  { %v37_v19 = vrot.slane %v35_v16, 4  ;;  %v56_v20 = vsel %vm55_vm2, %v49_v11, %v54_v18 }
  0x85   :  { %58 = vst [vmem:[#allocation3 + $0x8] sm:$0x33] %v56_v20 }
  0x86   :  { %v39_v21 = vsel %vm38_vm1, %v36_v17, %v37_v19 }
  0x87   :  { %v41_v22 = vsel %vm40_vm3, %v33_v12, %v39_v21 }
  0x88   :  { %43 = vst [vmem:[#allocation3] sm:$0xcc] %v41_v22 }
  0x8f   :  { %v153_v23 = vld [vmem:[#allocation3 + $0x4] ss:$8 sps:$4 sm:$0x3f]   ;;  %v155_v24 = vld [vmem:[#allocation3] ss:$8 sps:$4 sm:$0x3f]  }
  0x90   :  { %146 = vmatprep.subr.msk.bf16.mxu0 %vm80_vm4, %v153_v23  ;;  %v82_v25 = vsel %vm80_vm4, %v155_v24, 0 }
  0x91   :  { %88 = vmatpush1.bf16.msra.mxu0 %v82_v25 }
  0x94   :  { %147 = vmatmul.mubr.msk.bf16.vlgmr.msra.gmra.mrb[0].mxu0 %vm76_vm5, %v59_v26  ;;  %v66_v27 = vpop.permute.xlu0 %65 }
 0x167   :  { %v121_v28 = vpop.f32.mrb[0].mxu0 }
 0x168   :  { %v122_v29 = vadd.f32 %v121_v28, %v66_v27  ;;  %v123_v30 = vpop.f32.mrb[1].mxu0 }
 0x169   :  { %v124_v31 = vadd.f32 %v123_v30, %v66_v27  ;;  %v125_v32 = vpop.f32.mrb[2].mxu0 }
 0x16a   :  { %128 = vst [vmem:[#allocation4] sm:$0xff] %v122_v29  ;;  %v126_v33 = vpop.f32.mrb[3].mxu0 }
 0x16b   :  { %129 = vst [vmem:[#allocation4 + $0x8] sm:$0xff] %v124_v31 }
 0x16c   :  { %167 = shalt.err (!%p164_p4)
}
 0x16d   :  { %s168_s26 = scalar_lea.hbm %s237_s4, 256 }
 0x16e   :  { %p169_p5 = scmp.ne.s32.totalorder %s237_s4, %s168_s26  ;;  %p172_p6 = scmp.lt.u32.totalorder %s168_s26, %s237_s4 }
 0x170   :  { %p174_p7 = pnand %p172_p6, %p169_p5 }
 0x172   :  { %177 = shalt.err (!%p174_p7)
}
 0x173   :  { %139 = dma.vmem_to_hbm [thread:$0]  %s137_s23, 256, %s237_s4, [#allocation5]  }
 0x174   :  { %178 = dma.done.wait [#allocation5], 256  }
 0x175   :  { %179 = vsyncadd [#allocation5], 4294967040 }
 0x176   :  { %143 = vsyncpa [#allocation5], 1 }

</bundles_post_ra>
